<compile_context>
chip_gen: v7x
topology: tpu7x:2x2x1
jax: 0.10.0
libtpu: 0.0.40
codegen_flags: <defaults>
</compile_context>

<pallas_src>
import functools

import jax
import jax.numpy as jnp
from jax import lax
from jax.experimental import pallas as pl
from jax.experimental.pallas import tpu as pltpu


def _pair_property_kernel(x_ref, w1_ref, b1_ref, w2_ref, b2_ref, w3_ref,
                          b3_ref, o_ref, *, chunk, compute_dtype):
    tile_m = x_ref.shape[0]
    n_chunks = tile_m // chunk

    # Hoist all weight / bias loads out of the chunk loop.
    w1 = w1_ref[...]                       # (F, 128)  compute_dtype
    w2 = w2_ref[...]                       # (128, 64) compute_dtype
    w3 = w3_ref[...]                       # (64, 1)   compute_dtype
    b1 = b1_ref[...]                       # (1, 128)  f32
    b2 = b2_ref[...]                       # (1, 64)   f32
    b3 = b3_ref[0]                         # scalar    f32 (SMEM)

    def body(c, carry):
        r = pl.multiple_of(c * chunk, chunk)
        # (chunk, F) slice of pair messages; single cast to the MXU dtype.
        x = x_ref[pl.ds(r, chunk), :].astype(compute_dtype)
        # Layer 1 (MXU): (chunk, F) @ (F, 128) -> (chunk, 128), f32 acc.
        h1 = jnp.dot(x, w1, preferred_element_type=jnp.float32)
        h1 = jnp.maximum(h1 + b1, 0.0).astype(compute_dtype)
        # Layer 2 (MXU): (chunk, 128) @ (128, 64) -> (chunk, 64), f32 acc.
        h2 = jnp.dot(h1, w2, preferred_element_type=jnp.float32)
        h2 = jnp.maximum(h2 + b2, 0.0).astype(compute_dtype)
        # Layer 3 (MXU, narrow N): (chunk, 64) @ (64, 1) -> (chunk, 1).
        out = jnp.dot(h2, w3, preferred_element_type=jnp.float32) + b3
        o_ref[pl.ds(r, chunk), :] = out
        return carry

    lax.fori_loop(0, n_chunks, body, 0, unroll=True)


def pair_property_forward(msij, params, *, tile_m=4096,
                          compute_dtype=jnp.bfloat16):
    """Apply phi_pair MLP to msij of shape (..., n_features). Returns (..., 1).

    params are in PyTorch nn.Linear layout:
      w1 (128, F), b1 (128,), w2 (64, 128), b2 (64,), w3 (1, 64), b3 (1,)
    """
    w1, b1, w2, b2, w3, b3 = params
    n_out1, n_feat = w1.shape              # 128, F
    n_out2 = w2.shape[0]                   # 64
    lead_shape = msij.shape[:-1]

    # Pure metadata reshape — the kernel reads msij straight from HBM.
    x = msij.reshape(-1, n_feat)
    m = x.shape[0]

    # Lane-aligned tile size.  Keep >= 2 tiles when possible so the "parallel"
    # grid axis gives both v7x TensorCores work; Pallas clips the partial last
    # block so M needs no padding.
    tile_m = max(128, (tile_m // 128) * 128)
    m_lane = pl.cdiv(m, 128) * 128
    if m_lane >= 256:
        tile_m = min(tile_m, max(128, (m_lane // 2 // 128) * 128))
    else:
        tile_m = min(tile_m, m_lane)
    num_tiles = pl.cdiv(m, tile_m)
    chunk = 256 if tile_m % 256 == 0 else 128   # in-kernel row chunk (vreg-resident)

    # Tiny one-time weight transposes / casts (kept off the M-sized hot path).
    w1_t = w1.T.astype(compute_dtype)                   # (F, 128)
    w2_t = w2.T.astype(compute_dtype)                   # (128, 64)
    w3_t = w3.T.astype(compute_dtype)                   # (64, 1)
    b1r = b1.reshape(1, n_out1).astype(jnp.float32)     # (1, 128)
    b2r = b2.reshape(1, n_out2).astype(jnp.float32)     # (1, 64)
    b3r = b3.reshape(1).astype(jnp.float32)              # (1,) SMEM scalar

    flops = 2 * m * (n_feat * n_out1 + n_out1 * n_out2 + n_out2 * 1)
    bytes_accessed = (m * n_feat * x.dtype.itemsize + m * 4
                      + 2 * (n_feat * n_out1 + n_out1 * n_out2 + n_out2)
                      + 4 * (n_out1 + n_out2 + 1))

    kernel = functools.partial(_pair_property_kernel, chunk=chunk,
                               compute_dtype=compute_dtype)

    out = pl.pallas_call(
        kernel,
        out_shape=jax.ShapeDtypeStruct((m, 1), jnp.float32),
        grid_spec=pltpu.PrefetchScalarGridSpec(
            num_scalar_prefetch=0,
            grid=(num_tiles,),
            in_specs=[
                pl.BlockSpec((tile_m, n_feat), lambda i: (i, 0)),   # x tile
                pl.BlockSpec((n_feat, n_out1), lambda i: (0, 0)),   # w1^T
                pl.BlockSpec((1, n_out1),      lambda i: (0, 0)),   # b1
                pl.BlockSpec((n_out1, n_out2), lambda i: (0, 0)),   # w2^T
                pl.BlockSpec((1, n_out2),      lambda i: (0, 0)),   # b2
                pl.BlockSpec((n_out2, 1),      lambda i: (0, 0)),   # w3^T
                pl.BlockSpec(memory_space=pltpu.MemorySpace.SMEM),  # b3 scalar
            ],
            out_specs=pl.BlockSpec((tile_m, 1), lambda i: (i, 0)),
        ),
        compiler_params=pltpu.CompilerParams(
            dimension_semantics=("parallel",),
            vmem_limit_bytes=32 * 1024 * 1024),
        cost_estimate=pl.CostEstimate(flops=flops, transcendentals=0,
                                      bytes_accessed=bytes_accessed),
    )(x, w1_t, b1r, w2_t, b2r, w3_t, b3r)

    return out.reshape(*lead_shape, 1).astype(msij.dtype)


def init_pair_property_params(key, n_features, dtype=jnp.float32):
    """Deterministic init matching nn.Linear shapes: w (out, in), b (out,)."""
    ks = jax.random.split(key, 6)

    def linear(kw, kb, fan_in, fan_out):
        bound = fan_in ** -0.5
        w = jax.random.uniform(kw, (fan_out, fan_in), dtype, -bound, bound)
        b = jax.random.uniform(kb, (fan_out,), dtype, -bound, bound)
        return w, b

    w1, b1 = linear(ks[0], ks[1], n_features, 128)
    w2, b2 = linear(ks[2], ks[3], 128, 64)
    w3, b3 = linear(ks[4], ks[5], 64, 1)
    return (w1, b1, w2, b2, w3, b3)


def _reference_forward(msij, params):
    """Pure-f32 reference with PyTorch nn.Linear semantics."""
    w1, b1, w2, b2, w3, b3 = params
    h = jnp.maximum(msij @ w1.T + b1, 0.0)
    h = jnp.maximum(h @ w2.T + b2, 0.0)
    return h @ w3.T + b3


if __name__ == "__main__":
    key = jax.random.PRNGKey(0)
    k_param, k_x1, k_x2, k_x3 = jax.random.split(key, 4)

    n_features = 32
    params = init_pair_property_params(k_param, n_features)

    # Case 1: small lane-aligned pair count (batch=2, n_atoms=8 -> M=128).
    msij = jax.random.normal(k_x1, (2, 8, 8, n_features), dtype=jnp.float32)
    out = jax.block_until_ready(pair_property_forward(msij, params))
    ref = _reference_forward(msij, params)
    assert out.shape == (2, 8, 8, 1), out.shape
    assert jnp.allclose(out, ref, atol=5e-2, rtol=5e-2), \
        float(jnp.max(jnp.abs(out - ref)))

    # Case 2: pair count NOT a multiple of the tile (M=162) -> exercises the
    # partial-last-block path and a multi-step parallel grid.
    msij2 = jax.random.normal(k_x2, (2, 9, 9, n_features), dtype=jnp.float32)
    out2 = jax.block_until_ready(pair_property_forward(msij2, params))
    ref2 = _reference_forward(msij2, params)
    assert out2.shape == (2, 9, 9, 1), out2.shape
    assert jnp.allclose(out2, ref2, atol=5e-2, rtol=5e-2), \
        float(jnp.max(jnp.abs(out2 - ref2)))

    # Case 3: larger pair count (M=1152) -> multi-tile grid, multi-chunk
    # in-kernel loop, partial last block.
    msij3 = jax.random.normal(k_x3, (2, 24, 24, n_features), dtype=jnp.float32)
    out3 = jax.block_until_ready(pair_property_forward(msij3, params))
    ref3 = _reference_forward(msij3, params)
    assert out3.shape == (2, 24, 24, 1), out3.shape
    assert jnp.allclose(out3, ref3, atol=5e-2, rtol=5e-2), \
        float(jnp.max(jnp.abs(out3 - ref3)))

    print("KERNEL_OK")
</pallas_src>

<mosaic_0001>
module attributes {stable_mosaic.version = 11 : i64} {
  func.func @_pair_property_kernel(%arg0: i32, %arg1: memref<128x32xf32, #tpu.memory_space<vmem>>, %arg2: memref<32x128xbf16, #tpu.memory_space<vmem>>, %arg3: memref<1x128xf32, #tpu.memory_space<vmem>>, %arg4: memref<128x64xbf16, #tpu.memory_space<vmem>>, %arg5: memref<1x64xf32, #tpu.memory_space<vmem>>, %arg6: memref<64x1xbf16, #tpu.memory_space<vmem>>, %arg7: memref<1xf32, #tpu.memory_space<smem>>, %arg8: memref<128x1xf32, #tpu.memory_space<vmem>>) attributes {dimension_semantics = [#tpu.dimension_semantics<parallel>], iteration_bounds = array<i64: 1>, scalar_prefetch = 0 : i64, scratch_operands = 0 : i64, tpu.core_type = #tpu.core_type<tc>, window_params = [{transform_indices = @transform_0, window_bounds = array<i64: 128, 32>}, {pipeline_mode = #tpu.pipeline_mode<synchronous>, transform_indices = @transform_1, window_bounds = array<i64: 32, 128>}, {pipeline_mode = #tpu.pipeline_mode<synchronous>, transform_indices = @transform_2, window_bounds = array<i64: 1, 128>}, {pipeline_mode = #tpu.pipeline_mode<synchronous>, transform_indices = @transform_3, window_bounds = array<i64: 128, 64>}, {pipeline_mode = #tpu.pipeline_mode<synchronous>, transform_indices = @transform_4, window_bounds = array<i64: 1, 64>}, {pipeline_mode = #tpu.pipeline_mode<synchronous>, transform_indices = @transform_5, window_bounds = array<i64: 64, 1>}, {transform_indices = @transform_6, window_bounds = array<i64: 1>}, {transform_indices = @transform_7, window_bounds = array<i64: 128, 1>}]} {
    %c0 = arith.constant 0 : index
    %c0_0 = arith.constant 0 : index
    %0 = vector.load %arg2[%c0, %c0_0] : memref<32x128xbf16, #tpu.memory_space<vmem>>, vector<32x128xbf16>
    %c0_1 = arith.constant 0 : index
    %c0_2 = arith.constant 0 : index
    %1 = vector.load %arg4[%c0_1, %c0_2] : memref<128x64xbf16, #tpu.memory_space<vmem>>, vector<128x64xbf16>
    %c0_3 = arith.constant 0 : index
    %c0_4 = arith.constant 0 : index
    %2 = vector.load %arg6[%c0_3, %c0_4] : memref<64x1xbf16, #tpu.memory_space<vmem>>, vector<64x1xbf16>
    %c0_5 = arith.constant 0 : index
    %c0_6 = arith.constant 0 : index
    %3 = vector.load %arg3[%c0_5, %c0_6] : memref<1x128xf32, #tpu.memory_space<vmem>>, vector<1x128xf32>
    %c0_7 = arith.constant 0 : index
    %c0_8 = arith.constant 0 : index
    %4 = vector.load %arg5[%c0_7, %c0_8] : memref<1x64xf32, #tpu.memory_space<vmem>>, vector<1x64xf32>
    %c0_9 = arith.constant 0 : index
    %5 = memref.load %arg7[%c0_9] : memref<1xf32, #tpu.memory_space<smem>>
    %c0_i32 = arith.constant 0 : i32
    %c128_i32 = arith.constant 128 : i32
    %6 = arith.muli %c0_i32, %c128_i32 : i32
    %7 = tpu.assume_multiple %6, 128 : i32
    %8 = arith.index_cast %7 : i32 to index
    %c0_10 = arith.constant 0 : index
    %9 = vector.load %arg1[%8, %c0_10] : memref<128x32xf32, #tpu.memory_space<vmem>>, vector<128x32xf32>
    %10 = arith.truncf %9 : vector<128x32xf32> to vector<128x32xbf16>
    %cst = arith.constant dense<0.000000e+00> : vector<128x128xf32>
    %11 = tpu.matmul %10, %0, %cst {dimension_numbers = #tpu.dot_dimension_numbers<[1], [0], [0], [1], [0, 0, 1, 1], [], []>} : vector<128x32xbf16>, vector<32x128xbf16>, vector<128x128xf32> -> vector<128x128xf32>
    %12 = vector.broadcast %3 : vector<1x128xf32> to vector<128x128xf32>
    %13 = arith.addf %11, %12 : vector<128x128xf32>
    %cst_11 = arith.constant 0.000000e+00 : f32
    %14 = vector.broadcast %cst_11 : f32 to vector<128x128xf32>
    %15 = arith.maximumf %13, %14 : vector<128x128xf32>
    %16 = arith.truncf %15 : vector<128x128xf32> to vector<128x128xbf16>
    %cst_12 = arith.constant dense<0.000000e+00> : vector<128x64xf32>
    %17 = tpu.matmul %16, %1, %cst_12 {dimension_numbers = #tpu.dot_dimension_numbers<[1], [0], [0], [1], [0, 0, 1, 1], [], []>} : vector<128x128xbf16>, vector<128x64xbf16>, vector<128x64xf32> -> vector<128x64xf32>
    %18 = vector.broadcast %4 : vector<1x64xf32> to vector<128x64xf32>
    %19 = arith.addf %17, %18 : vector<128x64xf32>
    %cst_13 = arith.constant 0.000000e+00 : f32
    %20 = vector.broadcast %cst_13 : f32 to vector<128x64xf32>
    %21 = arith.maximumf %19, %20 : vector<128x64xf32>
    %22 = arith.truncf %21 : vector<128x64xf32> to vector<128x64xbf16>
    %cst_14 = arith.constant dense<0.000000e+00> : vector<128x1xf32>
    %23 = tpu.matmul %22, %2, %cst_14 {dimension_numbers = #tpu.dot_dimension_numbers<[1], [0], [0], [1], [0, 0, 1, 1], [], []>} : vector<128x64xbf16>, vector<64x1xbf16>, vector<128x1xf32> -> vector<128x1xf32>
    %24 = vector.broadcast %5 : f32 to vector<128x1xf32>
    %25 = arith.addf %23, %24 : vector<128x1xf32>
    %26 = arith.index_cast %7 : i32 to index
    %c0_15 = arith.constant 0 : index
    %27 = vector.load %arg8[%26, %c0_15] : memref<128x1xf32, #tpu.memory_space<vmem>>, vector<128x1xf32>
    tpu.vector_store %arg8[%26, %c0_15], %25 {strides = array<i32>} : memref<128x1xf32, #tpu.memory_space<vmem>>, vector<128x1xf32>,
    %c1_i32 = arith.constant 1 : i32
    return
  }
  func.func @transform_0(%arg0: i32) -> (i32, i32) {
    %c0_i32 = arith.constant 0 : i32
    %c0_i32_0 = arith.constant 0 : i32
    return %arg0, %c0_i32 : i32, i32
  }
  func.func @transform_1(%arg0: i32) -> (i32, i32) {
    %c0_i32 = arith.constant 0 : i32
    %c0_i32_0 = arith.constant 0 : i32
    %c0_i32_1 = arith.constant 0 : i32
    return %c0_i32, %c0_i32_0 : i32, i32
  }
  func.func @transform_2(%arg0: i32) -> (i32, i32) {
    %c0_i32 = arith.constant 0 : i32
    %c0_i32_0 = arith.constant 0 : i32
    %c0_i32_1 = arith.constant 0 : i32
    return %c0_i32, %c0_i32_0 : i32, i32
  }
  func.func @transform_3(%arg0: i32) -> (i32, i32) {
    %c0_i32 = arith.constant 0 : i32
    %c0_i32_0 = arith.constant 0 : i32
    %c0_i32_1 = arith.constant 0 : i32
    return %c0_i32, %c0_i32_0 : i32, i32
  }
  func.func @transform_4(%arg0: i32) -> (i32, i32) {
    %c0_i32 = arith.constant 0 : i32
    %c0_i32_0 = arith.constant 0 : i32
    %c0_i32_1 = arith.constant 0 : i32
    return %c0_i32, %c0_i32_0 : i32, i32
  }
  func.func @transform_5(%arg0: i32) -> (i32, i32) {
    %c0_i32 = arith.constant 0 : i32
    %c0_i32_0 = arith.constant 0 : i32
    %c0_i32_1 = arith.constant 0 : i32
    return %c0_i32, %c0_i32_0 : i32, i32
  }
  func.func @transform_6(%arg0: i32) -> i32 {
    %c0_i32 = arith.constant 0 : i32
    %c0_i32_0 = arith.constant 0 : i32
    return %c0_i32 : i32
  }
  func.func @transform_7(%arg0: i32) -> (i32, i32) {
    %c0_i32 = arith.constant 0 : i32
    %c0_i32_0 = arith.constant 0 : i32
    return %arg0, %c0_i32 : i32, i32
  }
}

</mosaic_0001>

<bundles_post_ra>
// kernel: tpu_custom_call.1
= control target key start
LH: loop header
LB: loop body
LE: loop exit
PB: predicated region body
PF: predicated region fallthrough
CT: control target
= control target key end

     0   :  { %vm101_vm0 = vcmask 261120   ;;  %vm447_vm1 = vcmask 523264   ;;  %vm569_vm2 = vcmask 7168   ;;  %s969_s1 = inlined_call_operand.vmem [shape: bf16[32,128], index: 1, kind: input, shape index: {}]   ;;  %s970_s0 = inlined_call_operand.vmem [shape: f32[128,32], index: 0, kind: input, shape index: {}]   ;;  %s971_s3 = inlined_call_operand.vmem [shape: bf16[128,64], index: 3, kind: input, shape index: {}]   ;;  %s972_s5 = inlined_call_operand.vmem [shape: bf16[64,1], index: 5, kind: input, shape index: {}]   ;;  %s973_s2 = inlined_call_operand.vmem [shape: f32[1,128], index: 2, kind: input, shape index: {}]   ;;  %s974_s4 = inlined_call_operand.vmem [shape: f32[1,64], index: 4, kind: input, shape index: {}]   ;;  %s975_s6 = inlined_call_operand.<no memory space> [shape: f32[1], index: 6, kind: input, shape index: {}]   ;;  %s976_s7 = inlined_call_operand.vmem [shape: f32[128,1], index: 7, kind: output, shape index: {}]  }
   0x1   :  { %v736_v0 = vld [vmem:[%s969_s1] sm:$0xff]   ;;  %v737_v1 = vld [vmem:[%s969_s1 + $0x8] sm:$0xff]   ;;  %v61_v5 = vld [vmem:[%s970_s0 + $0x10] sm:$0xff] }
   0x2   :  { %660 = vmatprep.subr.bf16.mxu0 %v736_v0  ;;  %v59_v2 = vld [vmem:[%s970_s0] sm:$0xff]  ;;  %v60_v3 = vld [vmem:[%s970_s0 + $0x8] sm:$0xff]  ;;  %v62_v6 = vld [vmem:[%s970_s0 + $0x18] sm:$0xff] }
   0x3   :  { %661 = vmatpush3.bf16.msra.mxu0 %v736_v0  ;;  %v75_v4 = vpack.c.bf16 %v60_v3, %v59_v2  ;;  %v63_v7 = vld [vmem:[%s970_s0 + $0x20] sm:$0xff]  ;;  %v64_v8 = vld [vmem:[%s970_s0 + $0x28] sm:$0xff]  ;;  %v76_v9 = vpack.c.bf16 %v62_v6, %v61_v5  ;;  %v65_v12 = vld [vmem:[%s970_s0 + $0x30] sm:$0xff] }
   0x4   :  { %662 = vmatprep.subr.bf16.mxu0 %v737_v1  ;;  %v77_v10 = vpack.c.bf16 %v64_v8, %v63_v7  ;;  %v738_v11 = vld [vmem:[%s971_s3] sm:$0xff]   ;;  %v66_v13 = vld [vmem:[%s970_s0 + $0x38] sm:$0xff]  ;;  %v739_v14 = vld [vmem:[%s971_s3 + $0x8] sm:$0xff]  }
   0x5   :  { %664 = vmatprep.mubr.msk.bf16.mxu0 %vm101_vm0, %v75_v4  ;;  %v67_v15 = vld [vmem:[%s970_s0 + $0x40] sm:$0xff]  ;;  %680 = vmatprep.subr.bf16.mxu1 %v738_v11  ;;  %v68_v16 = vld [vmem:[%s970_s0 + $0x48] sm:$0xff]  ;;  %v740_v17 = vld [vmem:[%s971_s3 + $0x10] sm:$0xff]   ;;  %v78_v18 = vpack.c.bf16 %v66_v13, %v65_v12 }
   0x6   :  { %681 = vmatpush3.bf16.msra.mxu1 %v738_v11  ;;  %v79_v19 = vpack.c.bf16 %v68_v16, %v67_v15  ;;  %v741_v20 = vld [vmem:[%s971_s3 + $0x18] sm:$0xff]   ;;  %v69_v21 = vld [vmem:[%s970_s0 + $0x50] sm:$0xff]  ;;  %v71_v23 = vld [vmem:[%s970_s0 + $0x60] sm:$0xff] }
   0x7   :  { %663 = vmatpush3.bf16.msra.mxu0 %v737_v1  ;;  %682 = vmatprep.subr.bf16.mxu1 %v739_v14  ;;  %v70_v22 = vld [vmem:[%s970_s0 + $0x58] sm:$0xff]  ;;  %v72_v24 = vld [vmem:[%s970_s0 + $0x68] sm:$0xff]  ;;  %v742_v25 = vld [vmem:[%s971_s3 + $0x20] sm:$0xff]  }
   0x8   :  { %v80_v26 = vpack.c.bf16 %v70_v22, %v69_v21  ;;  %v81_v27 = vpack.c.bf16 %v72_v24, %v71_v23  ;;  %v743_v28 = vld [vmem:[%s971_s3 + $0x28] sm:$0xff]   ;;  %v73_v29 = vld [vmem:[%s970_s0 + $0x70] sm:$0xff]  ;;  %v74_v30 = vld [vmem:[%s970_s0 + $0x78] sm:$0xff] }
   0x9   :  { %v82_v31 = vpack.c.bf16 %v74_v30, %v73_v29  ;;  %v744_v32 = vld [vmem:[%s971_s3 + $0x30] sm:$0xff]   ;;  %v745_v33 = vld [vmem:[%s971_s3 + $0x38] sm:$0xff]   ;;  %v746_v34 = vld [vmem:[%s972_s5] sm:$0xff]  }
   0xa   :  { %665 = vmatmul.mubr.msk.bf16.vlgmr.msra.gmra.mrb[0].mxu0 %vm101_vm0, %v76_v9  ;;  %683 = vmatpush3.bf16.msra.mxu1 %v739_v14  ;;  %v747_v35 = vld [vmem:[%s972_s5 + $0x8] sm:$0xff]   ;;  %v748_v36 = vld [vmem:[%s972_s5 + $0x10] sm:$0xff]   ;;  %v590_v37 = vld [vmem:[%s973_s2] ss:$0 sm:$0xff] }
   0xb   :  { %668 = vmatprep.mubr.msk.bf16.mxu0 %vm101_vm0, %v77_v10  ;;  %684 = vmatprep.subr.bf16.mxu1 %v740_v17  ;;  %v749_v30 = vld [vmem:[%s972_s5 + $0x18] sm:$0xff]  }
   0xc   :  { %712 = vmatprep.subr.bf16.mxu0 %v746_v34 }
   0xd   :  { %713 = vmatpush3.bf16.msra.mxu0 %v746_v34 }
   0xe   :  { %685 = vmatpush3.bf16.msra.mxu1 %v740_v17  ;;  %714 = vmatprep.subr.bf16.mxu0 %v747_v35 }
   0xf   :  { %686 = vmatprep.subr.bf16.mxu1 %v741_v20 }
  0x11   :  { %715 = vmatpush3.bf16.msra.mxu0 %v747_v35 }
  0x12   :  { %669 = vmatmul.mubr.msk.bf16.gmra.mrb[4].mxu0 %vm101_vm0, %v78_v18  ;;  %687 = vmatpush3.bf16.msra.mxu1 %v741_v20 }
  0x13   :  { %672 = vmatprep.mubr.msk.bf16.mxu0 %vm101_vm0, %v79_v19  ;;  %688 = vmatprep.subr.bf16.mxu1 %v742_v25 }
  0x14   :  { %716 = vmatprep.subr.bf16.mxu0 %v748_v36 }
  0x15   :  { %717 = vmatpush3.bf16.msra.mxu0 %v748_v36 }
  0x16   :  { %689 = vmatpush3.bf16.msra.mxu1 %v742_v25  ;;  %718 = vmatprep.subr.bf16.mxu0 %v749_v30 }
  0x17   :  { %690 = vmatprep.subr.bf16.mxu1 %v743_v28 }
  0x19   :  { %719 = vmatpush3.bf16.msra.mxu0 %v749_v30 }
  0x1a   :  { %673 = vmatmul.mubr.msk.bf16.gmra.mrb[8].mxu0 %vm101_vm0, %v80_v26  ;;  %691 = vmatpush3.bf16.msra.mxu1 %v743_v28 }
  0x1b   :  { %676 = vmatprep.mubr.msk.bf16.mxu0 %vm101_vm0, %v81_v27  ;;  %692 = vmatprep.subr.bf16.mxu1 %v744_v32 }
  0x1e   :  { %693 = vmatpush3.bf16.msra.mxu1 %v744_v32 }
  0x1f   :  { %694 = vmatprep.subr.bf16.mxu1 %v745_v33 }
  0x22   :  { %677 = vmatmul.mubr.msk.bf16.gmra.mrb[12].mxu0 %vm101_vm0, %v82_v31  ;;  %695 = vmatpush3.bf16.msra.mxu1 %v745_v33  ;;  %v601_v31 = vld [vmem:[%s974_s4] ss:$0 sm:$0xff] }
  0xdd   :  { %v666_v38 = vpop.f32.mrb[0].mxu0 }
  0xde   :  { %v169_v39 = vadd.f32 %v666_v38, %v590_v37  ;;  %v160_v40 = vpop.f32.mrb[1].mxu0 }
  0xdf   :  { %v161_v41 = vadd.f32 %v590_v37, %v160_v40  ;;  %v667_v42 = vpop.f32.mrb[2].mxu0 }
  0xe0   :  { %v172_v43 = vadd.f32 %v667_v42, %v590_v37  ;;  %v163_v44 = vpop.f32.mrb[3].mxu0  ;;  %v225_v46 = vmax.f32 %v169_v39, 0.0 }
  0xe1   :  { %v164_v45 = vadd.f32 %v590_v37, %v163_v44  ;;  %v223_v48 = vmax.f32 %v161_v41, 0.0 }
  0xe2   :  { %v226_v47 = vmax.f32 %v172_v43, 0.0 }
  0xe3   :  { %v224_v49 = vmax.f32 %v164_v45, 0.0 }
  0xe4   :  { %v240_v50 = vpack.c.bf16 %v226_v47, %v225_v46 }
  0xe5   :  { %v670_v51 = vpop.f32.mrb[4].mxu0  ;;  %v239_v52 = vpack.c.bf16 %v224_v49, %v223_v48 }
  0xe6   :  { %v185_v53 = vadd.f32 %v670_v51, %v590_v37  ;;  %v176_v54 = vpop.f32.mrb[5].mxu0 }
  0xe7   :  { %v177_v55 = vadd.f32 %v590_v37, %v176_v54  ;;  %v671_v56 = vpop.f32.mrb[6].mxu0  ;;  %696 = vmatprep.mubr.bf16.mxu1 %v239_v52 }
  0xe8   :  { %v188_v57 = vadd.f32 %v671_v56, %v590_v37  ;;  %v179_v58 = vpop.f32.mrb[7].mxu0  ;;  %697 = vmatmul.mubr.bf16.vlgmr.msra.gmra.mrb[0].mxu1 %v240_v50  ;;  %v229_v60 = vmax.f32 %v185_v53, 0.0 }
  0xe9   :  { %v180_v59 = vadd.f32 %v590_v37, %v179_v58  ;;  %v227_v62 = vmax.f32 %v177_v55, 0.0 }
  0xea   :  { %v230_v61 = vmax.f32 %v188_v57, 0.0 }
  0xeb   :  { %v228_v63 = vmax.f32 %v180_v59, 0.0 }
  0xec   :  { %v242_v0 = vpack.c.bf16 %v230_v61, %v229_v60 }
  0xed   :  { %v241_v1 = vpack.c.bf16 %v228_v63, %v227_v62  ;;  %v674_v2 = vpop.f32.mrb[8].mxu0 }
  0xee   :  { %v201_v3 = vadd.f32 %v674_v2, %v590_v37  ;;  %v192_v4 = vpop.f32.mrb[9].mxu0 }
  0xef   :  { %v193_v5 = vadd.f32 %v590_v37, %v192_v4  ;;  %v675_v6 = vpop.f32.mrb[10].mxu0  ;;  %700 = vmatprep.mubr.bf16.mxu1 %v241_v1 }
  0xf0   :  { %v204_v7 = vadd.f32 %v675_v6, %v590_v37  ;;  %v195_v8 = vpop.f32.mrb[11].mxu0  ;;  %701 = vmatmul.mubr.bf16.gmra.mrb[4].mxu1 %v242_v0  ;;  %v233_v10 = vmax.f32 %v201_v3, 0.0 }
  0xf1   :  { %v196_v9 = vadd.f32 %v590_v37, %v195_v8  ;;  %v231_v12 = vmax.f32 %v193_v5, 0.0 }
  0xf2   :  { %v234_v11 = vmax.f32 %v204_v7, 0.0 }
  0xf3   :  { %v232_v13 = vmax.f32 %v196_v9, 0.0 }
  0xf4   :  { %v244_v14 = vpack.c.bf16 %v234_v11, %v233_v10 }
  0xf5   :  { %v243_v15 = vpack.c.bf16 %v232_v13, %v231_v12  ;;  %v678_v16 = vpop.f32.mrb[12].mxu0 }
  0xf6   :  { %v217_v17 = vadd.f32 %v678_v16, %v590_v37  ;;  %v208_v18 = vpop.f32.mrb[13].mxu0 }
  0xf7   :  { %v209_v19 = vadd.f32 %v590_v37, %v208_v18  ;;  %v679_v20 = vpop.f32.mrb[14].mxu0  ;;  %704 = vmatprep.mubr.bf16.mxu1 %v243_v15 }
  0xf8   :  { %v220_v21 = vadd.f32 %v679_v20, %v590_v37  ;;  %v211_v22 = vpop.f32.mrb[15].mxu0  ;;  %705 = vmatmul.mubr.bf16.gmra.mrb[8].mxu1 %v244_v14  ;;  %v237_v24 = vmax.f32 %v217_v17, 0.0 }
  0xf9   :  { %v212_v23 = vadd.f32 %v590_v37, %v211_v22  ;;  %v235_v26 = vmax.f32 %v209_v19, 0.0 }
  0xfa   :  { %v238_v25 = vmax.f32 %v220_v21, 0.0 }
  0xfb   :  { %v236_v27 = vmax.f32 %v212_v23, 0.0 }
  0xfc   :  { %v246_v28 = vpack.c.bf16 %v238_v25, %v237_v24  ;;  %v422_v24 = vstv %s975_s6 }
  0xfd   :  { %v245_v29 = vpack.c.bf16 %v236_v27, %v235_v26 }
  0xff   :  { %708 = vmatprep.mubr.bf16.mxu1 %v245_v29 }
 0x100   :  { %709 = vmatmul.mubr.bf16.gmra.mrb[12].mxu1 %v246_v28 }
 0x1bb   :  { %v698_v32 = vpop.f32.mrb[0].mxu1 }
 0x1bc   :  { %v344_v33 = vadd.f32 %v698_v32, %v601_v31  ;;  %v335_v34 = vpop.f32.mrb[1].mxu1 }
 0x1bd   :  { %v336_v35 = vadd.f32 %v601_v31, %v335_v34  ;;  %v699_v36 = vpop.f32.mrb[2].mxu1 }
 0x1be   :  { %v347_v37 = vadd.f32 %v699_v36, %v601_v31  ;;  %v338_v38 = vpop.f32.mrb[3].mxu1  ;;  %v400_v40 = vmax.f32 %v344_v33, 0.0 }
 0x1bf   :  { %v339_v39 = vadd.f32 %v601_v31, %v338_v38  ;;  %v398_v42 = vmax.f32 %v336_v35, 0.0 }
 0x1c0   :  { %v401_v41 = vmax.f32 %v347_v37, 0.0 }
 0x1c1   :  { %v399_v43 = vmax.f32 %v339_v39, 0.0 }
 0x1c2   :  { %v415_v44 = vpack.c.bf16 %v401_v41, %v400_v40 }
 0x1c3   :  { %v414_v45 = vpack.c.bf16 %v399_v43, %v398_v42  ;;  %v702_v46 = vpop.f32.mrb[4].mxu1 }
 0x1c4   :  { %v360_v47 = vadd.f32 %v702_v46, %v601_v31  ;;  %v351_v48 = vpop.f32.mrb[5].mxu1 }
 0x1c5   :  { %v352_v49 = vadd.f32 %v601_v31, %v351_v48  ;;  %v703_v50 = vpop.f32.mrb[6].mxu1  ;;  %720 = vmatprep.mubr.msk.bf16.mxu0 %vm447_vm1, %v414_v45 }
 0x1c6   :  { %v363_v51 = vadd.f32 %v703_v50, %v601_v31  ;;  %v354_v52 = vpop.f32.mrb[7].mxu1  ;;  %721 = vmatmul.mubr.msk.bf16.vlgmr.msra.gmra.mrb[16].mxu0 %vm447_vm1, %v415_v44  ;;  %v404_v54 = vmax.f32 %v360_v47, 0.0 }
 0x1c7   :  { %v355_v53 = vadd.f32 %v601_v31, %v354_v52  ;;  %v402_v56 = vmax.f32 %v352_v49, 0.0 }
 0x1c8   :  { %v405_v55 = vmax.f32 %v363_v51, 0.0 }
 0x1c9   :  { %v403_v57 = vmax.f32 %v355_v53, 0.0 }
 0x1ca   :  { %v417_v58 = vpack.c.bf16 %v405_v55, %v404_v54 }
 0x1cb   :  { %v416_v59 = vpack.c.bf16 %v403_v57, %v402_v56  ;;  %v706_v60 = vpop.f32.mrb[8].mxu1 }
 0x1cc   :  { %v376_v61 = vadd.f32 %v706_v60, %v601_v31  ;;  %v367_v62 = vpop.f32.mrb[9].mxu1 }
 0x1cd   :  { %v368_v63 = vadd.f32 %v601_v31, %v367_v62  ;;  %v707_v0 = vpop.f32.mrb[10].mxu1  ;;  %724 = vmatprep.mubr.msk.bf16.mxu0 %vm447_vm1, %v416_v59 }
 0x1ce   :  { %v379_v1 = vadd.f32 %v707_v0, %v601_v31  ;;  %v370_v2 = vpop.f32.mrb[11].mxu1  ;;  %725 = vmatmul.mubr.msk.bf16.gmra.mrb[20].mxu0 %vm447_vm1, %v417_v58  ;;  %v408_v4 = vmax.f32 %v376_v61, 0.0 }
 0x1cf   :  { %v371_v3 = vadd.f32 %v601_v31, %v370_v2  ;;  %v406_v6 = vmax.f32 %v368_v63, 0.0 }
 0x1d0   :  { %v409_v5 = vmax.f32 %v379_v1, 0.0 }
 0x1d1   :  { %v407_v7 = vmax.f32 %v371_v3, 0.0 }
 0x1d2   :  { %v419_v8 = vpack.c.bf16 %v409_v5, %v408_v4 }
 0x1d3   :  { %v418_v9 = vpack.c.bf16 %v407_v7, %v406_v6  ;;  %v710_v10 = vpop.f32.mrb[12].mxu1 }
 0x1d4   :  { %v392_v11 = vadd.f32 %v710_v10, %v601_v31  ;;  %v383_v12 = vpop.f32.mrb[13].mxu1 }
 0x1d5   :  { %v384_v13 = vadd.f32 %v601_v31, %v383_v12  ;;  %v711_v14 = vpop.f32.mrb[14].mxu1  ;;  %728 = vmatprep.mubr.msk.bf16.mxu0 %vm447_vm1, %v418_v9 }
 0x1d6   :  { %v395_v15 = vadd.f32 %v711_v14, %v601_v31  ;;  %v386_v16 = vpop.f32.mrb[15].mxu1  ;;  %729 = vmatmul.mubr.msk.bf16.gmra.mrb[24].mxu0 %vm447_vm1, %v419_v8  ;;  %v412_v18 = vmax.f32 %v392_v11, 0.0 }
 0x1d7   :  { %v387_v17 = vadd.f32 %v601_v31, %v386_v16  ;;  %v410_v20 = vmax.f32 %v384_v13, 0.0 }
 0x1d8   :  { %v413_v19 = vmax.f32 %v395_v15, 0.0 }
 0x1d9   :  { %v411_v21 = vmax.f32 %v387_v17, 0.0 }
 0x1da   :  { %v421_v22 = vpack.c.bf16 %v413_v19, %v412_v18 }
 0x1db   :  { %v420_v23 = vpack.c.bf16 %v411_v21, %v410_v20 }
 0x1dd   :  { %732 = vmatprep.mubr.msk.bf16.mxu0 %vm447_vm1, %v420_v23 }
 0x1de   :  { %733 = vmatmul.mubr.msk.bf16.gmra.mrb[28].mxu0 %vm447_vm1, %v421_v22 }
 0x299   :  { %v722_v25 = vpop.f32.mrb[16].mxu0 }
 0x29a   :  { %v515_v26 = vadd.f32 %v722_v25, %v422_v24  ;;  %v506_v27 = vpop.f32.mrb[17].mxu0 }
 0x29b   :  { %v507_v28 = vadd.f32 %v506_v27, %v422_v24  ;;  %v723_v29 = vpop.f32.mrb[18].mxu0 }
 0x29c   :  { %572 = vst.msk [vmem:[%s976_s7 + $0x10] sm:$0xff] %vm569_vm2, %v515_v26  ;;  %v518_v30 = vadd.f32 %v723_v29, %v422_v24  ;;  %v509_v31 = vpop.f32.mrb[19].mxu0 }
 0x29d   :  { %570 = vst.msk [vmem:[%s976_s7] sm:$0xff] %vm569_vm2, %v507_v28  ;;  %v510_v32 = vadd.f32 %v509_v31, %v422_v24 }
 0x29e   :  { %573 = vst.msk [vmem:[%s976_s7 + $0x18] sm:$0xff] %vm569_vm2, %v518_v30 }
 0x29f   :  { %571 = vst.msk [vmem:[%s976_s7 + $0x8] sm:$0xff] %vm569_vm2, %v510_v32 }
 0x2a1   :  { %v726_v33 = vpop.f32.mrb[20].mxu0 }
 0x2a2   :  { %v531_v34 = vadd.f32 %v726_v33, %v422_v24  ;;  %v522_v35 = vpop.f32.mrb[21].mxu0 }
 0x2a3   :  { %v523_v36 = vadd.f32 %v522_v35, %v422_v24  ;;  %v727_v37 = vpop.f32.mrb[22].mxu0 }
 0x2a4   :  { %576 = vst.msk [vmem:[%s976_s7 + $0x30] sm:$0xff] %vm569_vm2, %v531_v34  ;;  %v534_v38 = vadd.f32 %v727_v37, %v422_v24  ;;  %v525_v39 = vpop.f32.mrb[23].mxu0 }
 0x2a5   :  { %574 = vst.msk [vmem:[%s976_s7 + $0x20] sm:$0xff] %vm569_vm2, %v523_v36  ;;  %v526_v40 = vadd.f32 %v525_v39, %v422_v24 }
 0x2a6   :  { %577 = vst.msk [vmem:[%s976_s7 + $0x38] sm:$0xff] %vm569_vm2, %v534_v38 }
 0x2a7   :  { %575 = vst.msk [vmem:[%s976_s7 + $0x28] sm:$0xff] %vm569_vm2, %v526_v40 }
 0x2a9   :  { %v730_v41 = vpop.f32.mrb[24].mxu0 }
 0x2aa   :  { %v547_v42 = vadd.f32 %v730_v41, %v422_v24  ;;  %v538_v43 = vpop.f32.mrb[25].mxu0 }
 0x2ab   :  { %v539_v44 = vadd.f32 %v538_v43, %v422_v24  ;;  %v731_v45 = vpop.f32.mrb[26].mxu0 }
 0x2ac   :  { %580 = vst.msk [vmem:[%s976_s7 + $0x50] sm:$0xff] %vm569_vm2, %v547_v42  ;;  %v550_v46 = vadd.f32 %v731_v45, %v422_v24  ;;  %v541_v47 = vpop.f32.mrb[27].mxu0 }
 0x2ad   :  { %578 = vst.msk [vmem:[%s976_s7 + $0x40] sm:$0xff] %vm569_vm2, %v539_v44  ;;  %v542_v48 = vadd.f32 %v541_v47, %v422_v24 }
 0x2ae   :  { %581 = vst.msk [vmem:[%s976_s7 + $0x58] sm:$0xff] %vm569_vm2, %v550_v46 }
 0x2af   :  { %579 = vst.msk [vmem:[%s976_s7 + $0x48] sm:$0xff] %vm569_vm2, %v542_v48 }
 0x2b1   :  { %v734_v49 = vpop.f32.mrb[28].mxu0 }
 0x2b2   :  { %v563_v50 = vadd.f32 %v734_v49, %v422_v24  ;;  %v554_v51 = vpop.f32.mrb[29].mxu0 }
 0x2b3   :  { %v555_v52 = vadd.f32 %v554_v51, %v422_v24  ;;  %v735_v53 = vpop.f32.mrb[30].mxu0 }
 0x2b4   :  { %584 = vst.msk [vmem:[%s976_s7 + $0x70] sm:$0xff] %vm569_vm2, %v563_v50  ;;  %v566_v54 = vadd.f32 %v735_v53, %v422_v24  ;;  %v557_v55 = vpop.f32.mrb[31].mxu0 }
 0x2b5   :  { %582 = vst.msk [vmem:[%s976_s7 + $0x60] sm:$0xff] %vm569_vm2, %v555_v52  ;;  %v558_v56 = vadd.f32 %v557_v55, %v422_v24 }
 0x2b6   :  { %585 = vst.msk [vmem:[%s976_s7 + $0x78] sm:$0xff] %vm569_vm2, %v566_v54 }
 0x2b7   :  { %583 = vst.msk [vmem:[%s976_s7 + $0x68] sm:$0xff] %vm569_vm2, %v558_v56 }

</bundles_post_ra>
